<compile_context>
chip_gen: v7x
topology: tpu7x:2x2x1
jax: 0.10.0
libtpu: 0.0.40
codegen_flags: <defaults>
</compile_context>

<pallas_src>
import math

import jax
import jax.numpy as jnp
from jax.experimental import pallas as pl
from jax.experimental.pallas import tpu as pltpu


def _round_up(x, m):
    return ((x + m - 1) // m) * m


# ---------------------------------------------------------------------------
# Stage 1: hoisted weight matmul   Y = X2d @ [W | P1 | P2]
# ---------------------------------------------------------------------------
def _weights_kernel(x_ref, w_ref, y_ref):
    y_ref[...] = jnp.dot(
        x_ref[...], w_ref[...], preferred_element_type=jnp.float32
    ).astype(y_ref.dtype)


def _apply_weights(x2d, wcat, *, row_block):
    rows, d = x2d.shape
    d3 = wcat.shape[1]
    rows_pad = _round_up(rows, row_block)
    if rows_pad != rows:
        x2d = jnp.pad(x2d, ((0, rows_pad - rows), (0, 0)))

    y = pl.pallas_call(
        _weights_kernel,
        out_shape=jax.ShapeDtypeStruct((rows_pad, d3), jnp.float32),
        grid_spec=pltpu.PrefetchScalarGridSpec(
            num_scalar_prefetch=0,
            grid=(rows_pad // row_block,),
            in_specs=[
                pl.BlockSpec((row_block, d), lambda i: (i, 0)),
                pl.BlockSpec((d, d3), lambda i: (0, 0)),
            ],
            out_specs=pl.BlockSpec((row_block, d3), lambda i: (i, 0)),
        ),
        compiler_params=pltpu.CompilerParams(
            dimension_semantics=("parallel",),
            vmem_limit_bytes=32 * 1024 * 1024),
        cost_estimate=pl.CostEstimate(
            flops=2 * rows_pad * d * d3,
            transcendentals=0,
            bytes_accessed=4 * (rows_pad * d + d * d3 + rows_pad * d3)),
    )(x2d, wcat)
    return y[:rows]


# ---------------------------------------------------------------------------
# Stage 2: out = SW + [adj1 | adj2] @ SP   over lane-dense time blocks
# ---------------------------------------------------------------------------
def _combine_kernel(sw_ref, sp_ref, a_ref, o_ref):
    o_ref[...] = (
        sw_ref[...]
        + jnp.dot(a_ref[...], sp_ref[...], preferred_element_type=jnp.float32)
    ).astype(o_ref.dtype)


def _combine(sw, sp, a, *, block_cols):
    n, cols = sw.shape
    n2 = sp.shape[0]
    cols_pad = _round_up(cols, block_cols)
    if cols_pad != cols:
        pad = cols_pad - cols
        sw = jnp.pad(sw, ((0, 0), (0, pad)))
        sp = jnp.pad(sp, ((0, 0), (0, pad)))

    out = pl.pallas_call(
        _combine_kernel,
        out_shape=jax.ShapeDtypeStruct((n, cols_pad), jnp.float32),
        grid_spec=pltpu.PrefetchScalarGridSpec(
            num_scalar_prefetch=0,
            grid=(cols_pad // block_cols,),
            in_specs=[
                pl.BlockSpec((n, block_cols), lambda j: (0, j)),   # SW slab
                pl.BlockSpec((n2, block_cols), lambda j: (0, j)),  # [SP1; SP2] slab
                pl.BlockSpec((n, n2), lambda j: (0, 0)),           # [adj1 | adj2] resident
            ],
            out_specs=pl.BlockSpec((n, block_cols), lambda j: (0, j)),
        ),
        compiler_params=pltpu.CompilerParams(
            dimension_semantics=("parallel",),
            vmem_limit_bytes=32 * 1024 * 1024),
        cost_estimate=pl.CostEstimate(
            flops=2 * n * n2 * cols_pad + n * cols_pad,
            transcendentals=0,
            bytes_accessed=4 * (2 * n * cols_pad + n2 * cols_pad + n * n2)),
    )(sw, sp, a)
    return out[:, :cols]


def model_p1_mlp_forward(X, adj1, adj2, w_est, p1_est, p2_est):
    """Pallas forward of model_p1_MLP.

    X: (T, n, d); adj1, adj2: (n, n); w_est, p1_est, p2_est: (d, d)
    Returns M: (T-2, n, d) float32.
    """
    T, n, d = X.shape
    Tm2 = T - 2
    assert Tm2 >= 1

    f32 = jnp.float32
    X = X.astype(f32)
    wcat = jnp.concatenate(
        [w_est.astype(f32), p1_est.astype(f32), p2_est.astype(f32)], axis=1)  # (d, 3d)

    # ---- Stage 1: one big matmul over all (node, time) rows; X read once. ----
    x2d = jnp.transpose(X, (1, 0, 2)).reshape(n * T, d)     # node-major rows
    row_block = min(2048, _round_up(n * T, 8))
    y = _apply_weights(x2d, wcat, row_block=row_block)      # (n*T, 3d)
    yt = y.reshape(n, T, 3 * d)

    # ---- Layout plumbing: time-shifted, lane-dense slabs of shape (n, Tm2*d). ----
    sw = yt[:, 2:, 0:d].reshape(n, Tm2 * d)                 # (X[t+2] @ W)
    sp1 = yt[:, 1:T - 1, d:2 * d]                           # (X[t+1] @ P1)
    sp2 = yt[:, 0:T - 2, 2 * d:3 * d]                       # (X[t]   @ P2)
    sp = jnp.concatenate([sp1, sp2], axis=0).reshape(2 * n, Tm2 * d)
    a = jnp.concatenate([adj1.astype(f32), adj2.astype(f32)], axis=1)  # (n, 2n)

    # ---- Time-block size: TB*d must be a multiple of 128 (lane-dense loads,
    # unmasked stores, MXU-shaped adj matmul); working set sized against the
    # smallest (v7x) VMEM so double-buffering always fits. ----
    q = 128 // math.gcd(d, 128)             # min time steps per 128-lane block
    vmem_budget = 8 * 1024 * 1024           # double-buffered sw + sp + out blocks
    max_cols = max(q * d, vmem_budget // (32 * max(n, 1)))
    tb = max(q, ((max_cols // d) // q) * q)
    tb = min(tb, _round_up(Tm2, q))
    block_cols = tb * d

    # NOTE: adj1/adj2 are kept fully resident in VMEM; for very large n the
    # adjacency rows would additionally need tiling over a second grid axis.
    out = _combine(sw, sp, a, block_cols=block_cols)        # (n, Tm2*d)
    return jnp.transpose(out.reshape(n, Tm2, d), (1, 0, 2))


def _reference_forward(X, adj1, adj2, w_est, p1_est, p2_est):
    hp = jax.lax.Precision.HIGHEST
    term1 = jnp.matmul(X[2:], w_est, precision=hp)
    term2 = jnp.matmul(jnp.matmul(adj1, X[1:-1], precision=hp), p1_est, precision=hp)
    term3 = jnp.matmul(jnp.matmul(adj2, X[:-2], precision=hp), p2_est, precision=hp)
    return term1 + term2 + term3


if __name__ == "__main__":
    key = jax.random.PRNGKey(0)

    configs = [
        (8, 16, 8),   # (T, n, d)
        (5, 16, 4),
    ]
    for T, n, d in configs:
        key, kx, k1, k2 = jax.random.split(key, 4)
        X = jax.random.normal(kx, (T, n, d), dtype=jnp.float32)
        adj1 = jax.random.normal(k1, (n, n), dtype=jnp.float32)
        adj2 = jax.random.normal(k2, (n, n), dtype=jnp.float32)

        # Parameters as in __init__: nn.Parameter(torch.ones((d, d)))
        w_est = jnp.ones((d, d), dtype=jnp.float32)
        p1_est = jnp.ones((d, d), dtype=jnp.float32)
        p2_est = jnp.ones((d, d), dtype=jnp.float32)

        M = model_p1_mlp_forward(X, adj1, adj2, w_est, p1_est, p2_est)
        M = jax.block_until_ready(M)

        M_ref = _reference_forward(X, adj1, adj2, w_est, p1_est, p2_est)
        assert M.shape == (T - 2, n, d)
        assert jnp.allclose(M, M_ref, atol=1e-4, rtol=1e-4), (
            "max abs err = %f" % float(jnp.max(jnp.abs(M - M_ref))))

    print("KERNEL_OK")
</pallas_src>

<mosaic_0001>
module attributes {stable_mosaic.version = 11 : i64} {
  func.func @_weights_kernel(%arg0: i32, %arg1: memref<128x8xf32, #tpu.memory_space<vmem>>, %arg2: memref<8x24xf32, #tpu.memory_space<vmem>>, %arg3: memref<128x24xf32, #tpu.memory_space<vmem>>) attributes {dimension_semantics = [#tpu.dimension_semantics<parallel>], iteration_bounds = array<i64: 1>, scalar_prefetch = 0 : i64, scratch_operands = 0 : i64, tpu.core_type = #tpu.core_type<tc>, window_params = [{transform_indices = @transform_0, window_bounds = array<i64: 128, 8>}, {pipeline_mode = #tpu.pipeline_mode<synchronous>, transform_indices = @transform_1, window_bounds = array<i64: 8, 24>}, {transform_indices = @transform_2, window_bounds = array<i64: 128, 24>}]} {
    %c0 = arith.constant 0 : index
    %c0_0 = arith.constant 0 : index
    %0 = vector.load %arg1[%c0, %c0_0] : memref<128x8xf32, #tpu.memory_space<vmem>>, vector<128x8xf32>
    %c0_1 = arith.constant 0 : index
    %c0_2 = arith.constant 0 : index
    %1 = vector.load %arg2[%c0_1, %c0_2] : memref<8x24xf32, #tpu.memory_space<vmem>>, vector<8x24xf32>
    %cst = arith.constant dense<0.000000e+00> : vector<128x24xf32>
    %2 = tpu.matmul %0, %1, %cst {dimension_numbers = #tpu.dot_dimension_numbers<[1], [0], [0], [1], [0, 0, 1, 1], [], []>} : vector<128x8xf32>, vector<8x24xf32>, vector<128x24xf32> -> vector<128x24xf32>
    %c0_3 = arith.constant 0 : index
    %c0_4 = arith.constant 0 : index
    %3 = vector.load %arg3[%c0_3, %c0_4] : memref<128x24xf32, #tpu.memory_space<vmem>>, vector<128x24xf32>
    tpu.vector_store %arg3[%c0_3, %c0_4], %2 {strides = array<i32>} : memref<128x24xf32, #tpu.memory_space<vmem>>, vector<128x24xf32>,
    return
  }
  func.func @transform_0(%arg0: i32) -> (i32, i32) {
    %c0_i32 = arith.constant 0 : i32
    %c0_i32_0 = arith.constant 0 : i32
    return %arg0, %c0_i32 : i32, i32
  }
  func.func @transform_1(%arg0: i32) -> (i32, i32) {
    %c0_i32 = arith.constant 0 : i32
    %c0_i32_0 = arith.constant 0 : i32
    %c0_i32_1 = arith.constant 0 : i32
    return %c0_i32, %c0_i32_0 : i32, i32
  }
  func.func @transform_2(%arg0: i32) -> (i32, i32) {
    %c0_i32 = arith.constant 0 : i32
    %c0_i32_0 = arith.constant 0 : i32
    return %arg0, %c0_i32 : i32, i32
  }
}

</mosaic_0001>

<bundles_post_ra>
// kernel: tpu_custom_call.1
= control target key start
LH: loop header
LB: loop body
LE: loop exit
PB: predicated region body
PF: predicated region fallthrough
CT: control target
= control target key end

     0   :  { %vm28_vm0 = vcmask 64512   ;;  %vm222_vm1 = vcmask 195584   ;;  %s450_s1 = inlined_call_operand.vmem [shape: f32[8,24], index: 1, kind: input, shape index: {}]   ;;  %s451_s0 = inlined_call_operand.vmem [shape: f32[128,8], index: 0, kind: input, shape index: {}]   ;;  %s452_s2 = inlined_call_operand.vmem [shape: f32[128,24], index: 2, kind: output, shape index: {}]  }
   0x1   :  { %v27_v0 = vld [vmem:[%s450_s1] sm:$0xff]  ;;  %v12_v3 = vld [vmem:[%s451_s0 + $0x8] sm:$0xff]  ;;  %v13_v5 = vld [vmem:[%s451_s0 + $0x10] sm:$0xff] }
   0x2   :  { %v11_v1 = vld [vmem:[%s451_s0] sm:$0xff]  ;;  %276 = vmatprep.subr.mxu0 %v27_v0  ;;  %302 = vmatprep.subr.mxu1 %v27_v0  ;;  %v20_v4 = vld [vmem:[%s451_s0 + $0x48] sm:$0xff]  ;;  %v21_v6 = vld [vmem:[%s451_s0 + $0x50] sm:$0xff] }
   0x3   :  { %v19_v2 = vld [vmem:[%s451_s0 + $0x40] sm:$0xff]  ;;  %277 = vmatpush3.msra.mxu0 %v27_v0  ;;  %303 = vmatpush3.msra.mxu1 %v27_v0  ;;  %v14_v7 = vld [vmem:[%s451_s0 + $0x18] sm:$0xff]  ;;  %v16_v11 = vld [vmem:[%s451_s0 + $0x28] sm:$0xff] }
   0x4   :  { %278 = vmatprep.mubr.msk.f32.mxu0 %vm28_vm0, %v11_v1  ;;  %290 = vmatprep.mubr.msk.f32.mxu1 %vm28_vm0, %v19_v2  ;;  %v22_v8 = vld [vmem:[%s451_s0 + $0x58] sm:$0xff]  ;;  %v15_v9 = vld [vmem:[%s451_s0 + $0x20] sm:$0xff]  ;;  %v24_v12 = vld [vmem:[%s451_s0 + $0x68] sm:$0xff] }
   0x5   :  { %279 = vmatmul.mubr.msk.f32.vlgmr.msra.gmra.mrb[0].mxu0 %vm28_vm0, %v12_v3  ;;  %291 = vmatmul.mubr.msk.f32.vlgmr.msra.gmra.mrb[0].mxu1 %vm28_vm0, %v20_v4  ;;  %v23_v10 = vld [vmem:[%s451_s0 + $0x60] sm:$0xff]  ;;  %v17_v13 = vld [vmem:[%s451_s0 + $0x30] sm:$0xff]  ;;  %v18_v15 = vld [vmem:[%s451_s0 + $0x38] sm:$0xff] }
   0x6   :  { %281 = vmatprep.mubr.msk.f32.mxu0 %vm28_vm0, %v13_v5  ;;  %293 = vmatprep.mubr.msk.f32.mxu1 %vm28_vm0, %v21_v6  ;;  %v25_v14 = vld [vmem:[%s451_s0 + $0x70] sm:$0xff]  ;;  %v26_v16 = vld [vmem:[%s451_s0 + $0x78] sm:$0xff] }
   0x9   :  { %282 = vmatmul.mubr.msk.f32.gmra.mrb[2].mxu0 %vm28_vm0, %v14_v7  ;;  %294 = vmatmul.mubr.msk.f32.gmra.mrb[2].mxu1 %vm28_vm0, %v22_v8 }
   0xa   :  { %284 = vmatprep.mubr.msk.f32.mxu0 %vm28_vm0, %v15_v9  ;;  %296 = vmatprep.mubr.msk.f32.mxu1 %vm28_vm0, %v23_v10 }
   0xd   :  { %285 = vmatmul.mubr.msk.f32.gmra.mrb[4].mxu0 %vm28_vm0, %v16_v11  ;;  %297 = vmatmul.mubr.msk.f32.gmra.mrb[4].mxu1 %vm28_vm0, %v24_v12 }
   0xe   :  { %287 = vmatprep.mubr.msk.f32.mxu0 %vm28_vm0, %v17_v13  ;;  %299 = vmatprep.mubr.msk.f32.mxu1 %vm28_vm0, %v25_v14 }
  0x11   :  { %288 = vmatmul.mubr.msk.f32.gmra.mrb[6].mxu0 %vm28_vm0, %v18_v15  ;;  %300 = vmatmul.mubr.msk.f32.gmra.mrb[6].mxu1 %vm28_vm0, %v26_v16 }
  0xd8   :  { %v280_v17 = vpop.f32.mrb[0].mxu0  ;;  %v292_v18 = vpop.f32.mrb[0].mxu1 }
  0xd9   :  { %224 = vst.msk [vmem:[%s452_s2 + $0x8] sm:$0xff] %vm222_vm1, %v280_v17  ;;  %232 = vst.msk [vmem:[%s452_s2 + $0x48] sm:$0xff] %vm222_vm1, %v292_v18  ;;  %v143_v19 = vpop.f32.mrb[1].mxu0  ;;  %v183_v20 = vpop.f32.mrb[1].mxu1 }
  0xda   :  { %223 = vst.msk [vmem:[%s452_s2] sm:$0xff] %vm222_vm1, %v143_v19  ;;  %231 = vst.msk [vmem:[%s452_s2 + $0x40] sm:$0xff] %vm222_vm1, %v183_v20 }
  0xdc   :  { %v283_v21 = vpop.f32.mrb[2].mxu0  ;;  %v295_v22 = vpop.f32.mrb[2].mxu1 }
  0xdd   :  { %226 = vst.msk [vmem:[%s452_s2 + $0x18] sm:$0xff] %vm222_vm1, %v283_v21  ;;  %234 = vst.msk [vmem:[%s452_s2 + $0x58] sm:$0xff] %vm222_vm1, %v295_v22  ;;  %v153_v23 = vpop.f32.mrb[3].mxu0  ;;  %v193_v24 = vpop.f32.mrb[3].mxu1 }
  0xde   :  { %225 = vst.msk [vmem:[%s452_s2 + $0x10] sm:$0xff] %vm222_vm1, %v153_v23  ;;  %233 = vst.msk [vmem:[%s452_s2 + $0x50] sm:$0xff] %vm222_vm1, %v193_v24 }
  0xe0   :  { %v286_v25 = vpop.f32.mrb[4].mxu0  ;;  %v298_v26 = vpop.f32.mrb[4].mxu1 }
  0xe1   :  { %228 = vst.msk [vmem:[%s452_s2 + $0x28] sm:$0xff] %vm222_vm1, %v286_v25  ;;  %236 = vst.msk [vmem:[%s452_s2 + $0x68] sm:$0xff] %vm222_vm1, %v298_v26  ;;  %v163_v27 = vpop.f32.mrb[5].mxu0  ;;  %v203_v28 = vpop.f32.mrb[5].mxu1 }
  0xe2   :  { %227 = vst.msk [vmem:[%s452_s2 + $0x20] sm:$0xff] %vm222_vm1, %v163_v27  ;;  %235 = vst.msk [vmem:[%s452_s2 + $0x60] sm:$0xff] %vm222_vm1, %v203_v28 }
  0xe4   :  { %v289_v29 = vpop.f32.mrb[6].mxu0  ;;  %v301_v30 = vpop.f32.mrb[6].mxu1 }
  0xe5   :  { %230 = vst.msk [vmem:[%s452_s2 + $0x38] sm:$0xff] %vm222_vm1, %v289_v29  ;;  %238 = vst.msk [vmem:[%s452_s2 + $0x78] sm:$0xff] %vm222_vm1, %v301_v30  ;;  %v173_v31 = vpop.f32.mrb[7].mxu0  ;;  %v213_v32 = vpop.f32.mrb[7].mxu1 }
  0xe6   :  { %229 = vst.msk [vmem:[%s452_s2 + $0x30] sm:$0xff] %vm222_vm1, %v173_v31  ;;  %237 = vst.msk [vmem:[%s452_s2 + $0x70] sm:$0xff] %vm222_vm1, %v213_v32 }

</bundles_post_ra>
